<compile_context>
chip_gen: v5e
topology: v5e:2x2
jax: 0.10.0
libtpu: 0.0.40
codegen_flags: <defaults>
</compile_context>

<pallas_src>
import jax
import jax.numpy as jnp
from jax.experimental import pallas as pl
from jax.experimental.pallas import tpu as pltpu

_MIN_PALLAS_BYTES = 256 * 1024  # below this, an XLA jnp.roll beats a kernel launch


def _tpu_config():
    """Returns (target_block_bytes, vmem_limit_bytes, min_grid_steps)."""
    kind = ""
    try:
        kind = jax.devices()[0].device_kind.lower()
    except Exception:
        pass
    if "v7" in kind:
        # 2 TensorCores, 64 MiB physical VMEM, ~3.2 TB/s HBM: 8 MiB blocks keep
        # per-step overhead small; 4x double-buffered working set (~32 MiB) fits
        # the 48 MiB scoped limit; >=4 grid steps so both TCs pipeline.
        return 8 * 1024 * 1024, 48 * 1024 * 1024, 4
    # v5e / v6e: single TensorCore, 128 MiB physical VMEM.  Larger blocks, no
    # reason to split work for megacore.
    return 12 * 1024 * 1024, 64 * 1024 * 1024, 1


def _make_roll_kernel(shift: int):
    """`shift` is a static Python int in (0, T)."""

    def kernel(x_ref, o_ref):
        # out[r, t] = x[r, (t - shift) % T] == jnp.roll(x, shift, axis=-1):
        # one XLU lane rotation on the whole VMEM tile (no VALU / no copies).
        o_ref[...] = pltpu.roll(x_ref[...], shift, 1)

    return kernel


def _pick_rows_per_block(n_rows, row_bytes, itemsize, target_block_bytes, min_grid_steps):
    """Fixed aligned block height; grid uses cdiv, last block may be partial."""
    # dtype-aware sublane alignment: 8 rows for 32-bit, 16 for bf16, 32 for int8/fp8.
    align = max(8, 32 // max(1, itemsize))
    budget_rows = max(1, target_block_bytes // max(1, row_bytes))
    if min_grid_steps > 1 and n_rows > align:
        # v7x only: cap block height so both TensorCores get >= 2 blocks each.
        budget_rows = min(budget_rows, max(1, pl.cdiv(n_rows, min_grid_steps)))
    rows = (budget_rows // align) * align
    if rows == 0:
        rows = align
    # If rows >= n_rows we use the full extent (always layout-legal); otherwise
    # rows is a multiple of `align`, also legal, with a partial last block.
    return min(rows, n_rows)


def _roll_rows_pallas(x2: jax.Array, shift: int, *, rows_per_block=None) -> jax.Array:
    n_rows, T = x2.shape
    row_bytes = T * x2.dtype.itemsize
    target_block_bytes, vmem_limit, min_grid_steps = _tpu_config()

    if rows_per_block is None:
        rows_per_block = _pick_rows_per_block(
            n_rows, row_bytes, x2.dtype.itemsize, target_block_bytes, min_grid_steps
        )

    # Double-buffered in + out ~= 4x block; keep headroom under the scoped limit.
    if 4 * rows_per_block * row_bytes > vmem_limit - (2 << 20):
        # TODO(synk): add a T-tiled two-segment copy path (static shift ->
        # element-offset index maps) for extremely long T instead of this
        # XLA-level fallback.
        return jnp.roll(x2, shift, axis=-1)

    grid = (pl.cdiv(n_rows, rows_per_block),)
    return pl.pallas_call(
        _make_roll_kernel(shift),
        out_shape=jax.ShapeDtypeStruct((n_rows, T), x2.dtype),
        grid=grid,
        in_specs=[pl.BlockSpec((rows_per_block, T), lambda i: (i, 0))],
        out_specs=pl.BlockSpec((rows_per_block, T), lambda i: (i, 0)),
        compiler_params=pltpu.CompilerParams(
            dimension_semantics=("parallel",),
            vmem_limit_bytes=vmem_limit,
        ),
    )(x2)


def translation1d(x: jax.Array, n_steps: int, *, force_pallas: bool = False,
                  rows_per_block=None) -> jax.Array:
    """Pallas implementation of Translation1D.forward for x of shape (B, C, T)."""
    B, C, T = x.shape
    shift = int(n_steps) % T

    if shift == 0:
        # Identity permutation: skip the HBM read+write round trip entirely.
        return x

    total_bytes = x.size * x.dtype.itemsize
    min_pallas = _MIN_PALLAS_BYTES
    if T % 128 != 0:
        # Non-lane-dense T forces masked partial stores in the kernel; prefer
        # letting XLA fuse the roll for a while longer.
        min_pallas *= 4
    if not force_pallas and total_bytes < min_pallas:
        return jnp.roll(x, shift, axis=-1)

    # Flatten (B, C, T) -> (B*C, T): contiguous (free) reshape giving a simple
    # 2-D (rows, lanes) tiling.  Blocks keep the full T axis so the shift is a
    # single in-tile rotate.
    out2 = _roll_rows_pallas(x.reshape(B * C, T), shift, rows_per_block=rows_per_block)
    return out2.reshape(B, C, T)


if __name__ == "__main__":
    key = jax.random.PRNGKey(0)

    # Small shape consistent with the module: (batch, channels, time).
    B, C, T = 2, 4, 16
    x = jax.random.normal(key, (B, C, T), dtype=jnp.float32)
    n_steps = 5  # deterministic symmetry parameter (module would sample it)

    # Force the Pallas path even at this tiny size so the kernel is exercised.
    out = jax.block_until_ready(translation1d(x, n_steps, force_pallas=True))
    ref = x[:, :, (jnp.arange(T) - n_steps) % T]
    assert out.shape == (B, C, T)
    assert out.dtype == x.dtype
    assert bool(jnp.allclose(out, ref)), "mismatch vs reference (small)"

    # shift == 0 and shift == T both short-circuit to the identity.
    out0 = jax.block_until_ready(translation1d(x, 0, force_pallas=True))
    assert bool(jnp.allclose(out0, x)), "mismatch (shift=0)"
    outT = jax.block_until_ready(translation1d(x, T, force_pallas=True))
    assert bool(jnp.allclose(outT, x)), "mismatch (shift=T)"

    # Multi-block grid with a partial last block (26 rows, forced 8-row blocks).
    B2, C2, T2 = 2, 13, 256
    x2 = jax.random.normal(jax.random.PRNGKey(1), (B2, C2, T2), dtype=jnp.float32)
    n2 = 37
    out2 = jax.block_until_ready(
        translation1d(x2, n2, force_pallas=True, rows_per_block=8)
    )
    ref2 = x2[:, :, (jnp.arange(T2) - n2) % T2]
    assert bool(jnp.allclose(out2, ref2)), "mismatch vs reference (partial block)"

    # bf16 path (dtype-aware sublane alignment -> 16-row aligned tiles).
    B3, C3, T3 = 4, 64, 128
    x3 = jax.random.normal(jax.random.PRNGKey(2), (B3, C3, T3), dtype=jnp.bfloat16)
    n3 = 100
    out3 = jax.block_until_ready(translation1d(x3, n3, force_pallas=True))
    ref3 = x3[:, :, (jnp.arange(T3) - n3) % T3]
    assert bool(jnp.array_equal(out3, ref3)), "mismatch vs reference (bf16)"

    print("KERNEL_OK")
</pallas_src>

<mosaic_0001>
module attributes {stable_mosaic.version = 11 : i64} {
  func.func @kernel(%arg0: i32, %arg1: memref<8x16xf32, #tpu.memory_space<vmem>>, %arg2: memref<8x16xf32, #tpu.memory_space<vmem>>) attributes {dimension_semantics = [#tpu.dimension_semantics<parallel>], iteration_bounds = array<i64: 1>, scalar_prefetch = 0 : i64, scratch_operands = 0 : i64, tpu.core_type = #tpu.core_type<tc>, window_params = [{transform_indices = @transform_0, window_bounds = array<i64: 8, 16>}, {transform_indices = @transform_1, window_bounds = array<i64: 8, 16>}]} {
    %c0 = arith.constant 0 : index
    %c0_0 = arith.constant 0 : index
    %0 = vector.load %arg1[%c0, %c0_0] : memref<8x16xf32, #tpu.memory_space<vmem>>, vector<8x16xf32>
    %c5_i32 = arith.constant 5 : i32
    %1 = tpu.dynamic_rotate %0 by %c5_i32 dim 1 : vector<8x16xf32>, i32 -> vector<8x16xf32>
    %c0_1 = arith.constant 0 : index
    %c0_2 = arith.constant 0 : index
    %2 = vector.load %arg2[%c0_1, %c0_2] : memref<8x16xf32, #tpu.memory_space<vmem>>, vector<8x16xf32>
    tpu.vector_store %arg2[%c0_1, %c0_2], %1 {strides = array<i32>} : memref<8x16xf32, #tpu.memory_space<vmem>>, vector<8x16xf32>,
    return
  }
  func.func @transform_0(%arg0: i32) -> (i32, i32) {
    %c0_i32 = arith.constant 0 : i32
    %c0_i32_0 = arith.constant 0 : i32
    return %arg0, %c0_i32 : i32, i32
  }
  func.func @transform_1(%arg0: i32) -> (i32, i32) {
    %c0_i32 = arith.constant 0 : i32
    %c0_i32_0 = arith.constant 0 : i32
    return %arg0, %c0_i32 : i32, i32
  }
}

</mosaic_0001>

<bundles_post_ra>
// kernel: tpu_custom_call.1
= control target key start
LH: loop header
LB: loop body
LE: loop exit
PB: predicated region body
PF: predicated region fallthrough
CT: control target
= control target key end

     0   :  { %6 = vsyncpa [#allocation3], 0  ;;  %s130_s0 = inlined_call_operand.hbm [shape: f32[8,16], index: 0, kind: input, shape index: {}]   ;;  %s131_s1 = inlined_call_operand.hbm [shape: f32[8,16], index: 1, kind: output, shape index: {}]  }
   0x1   :  { %7 = vsyncpa [#allocation4], 0  ;;  %s13_s8 = sshll.u32 %s130_s0, 4  ;;  %s110_s9 = smov [#allocation2]   ;;  %s14_s8 = int_to_ptr.hbm [resolvable:$true] %s13_s8 }
   0x2   :  { %s15_s10 = sshll.u32 %s110_s9, 4  ;;  %s16_s10 = int_to_ptr.vmem [resolvable:$true] %s15_s10 }
   0x3   :  { %18 = dma.hbm_to_vmem [thread:$0]  %s14_s8, 128, %s16_s10, [#allocation3]  }
   0x4   :  { %106 = dma.done.wait [#allocation3], 128  }
   0x5   :  { %107 = vsyncadd [#allocation3], 4294967168  ;;  %v23_v0 = vld [vmem:[#allocation2] sm:$0xff]  ;;  %s111_s11 = smov 16   ;;  %vm24_vm0 = vcmask 1047680   ;;  %s112_s12 = smov 117  }
   0x6   :  { %25 = vrot.lane.b32.xlu0 %v23_v0, %s111_s11  ;;  %s113_s13 = smov [#allocation5]   ;;  %s44_s16 = sshll.u32 %s131_s1, 4  ;;  %vm35_vm1 = vcmask 130048   ;;  %s45_s16 = int_to_ptr.hbm [resolvable:$true] %s44_s16 }
   0x7   :  { %s42_s0 = sshll.u32 %s113_s13, 4  ;;  %s43_s0 = int_to_ptr.vmem [resolvable:$true] %s42_s0 }
  0x78   :  { %v26_v1 = vpop.permute.xlu0 %25 }
  0x79   :  { %v27_v2 = vsel %vm24_vm0, %v26_v1, %v23_v0 }
  0x7a   :  { %28 = vrot.lane.b32.xlu0 %v27_v2, %s111_s11 }
  0xec   :  { %v29_v3 = vpop.permute.xlu0 %28 }
  0xed   :  { %v30_v4 = vsel %vm24_vm0, %v29_v3, %v23_v0 }
  0xee   :  { %32 = vrot.lane.b32.xlu1 %v30_v4, %s112_s12 }
 0x160   :  { %v33_v5 = vpop.permute.xlu1 %32 }
 0x161   :  { %36 = vst.msk [vmem:[#allocation5] sm:$0xff] %vm35_vm1, %v33_v5 }
 0x162   :  { %47 = dma.vmem_to_hbm [thread:$0]  %s43_s0, 128, %s45_s16, [#allocation4]  }
 0x163   :  { %108 = dma.done.wait [#allocation4], 128  }
 0x164   :  { %109 = vsyncadd [#allocation4], 4294967168 }
 0x165   :  { %52 = vsyncpa [#allocation3], 1 }
 0x166   :  { %53 = vsyncpa [#allocation4], 1 }

</bundles_post_ra>
